<compile_context>
chip_gen: v5e
topology: v5e:2x2
jax: 0.10.0
libtpu: 0.0.40
codegen_flags: <defaults>
</compile_context>

<pallas_src>
import functools

import jax
import jax.numpy as jnp
from jax.experimental import pallas as pl
from jax.experimental.pallas import tpu as pltpu


def _round_up(n: int, m: int) -> int:
    return ((n + m - 1) // m) * m


def _pad2(x, target_shape):
    """Zero-pad a 2-D array up to target_shape (no-op if already there)."""
    pads = [(0, t - s) for s, t in zip(x.shape, target_shape)]
    if all(p == (0, 0) for p in pads):
        return x
    return jnp.pad(x, pads)


def _perturbation_kernel(s_ref, a_ref, w1s_ref, w1a_ref, b1_ref, w2_ref, b2_ref,
                         o_ref, *, phi, max_action):
    # s_ref:   [bB, Sk]   (f32, or bf16 on the reduced-traffic path)
    # a_ref:   [bB, A]    (always f32; cast in-kernel only for the matmul)
    # w1s_ref: [Sk, Hp]   w1a_ref: [A, Hp]   b1_ref: [1, Hp]
    # w2_ref:  [Hp, A]    b2_ref:  [1, A]
    s = s_ref[...]
    a = a_ref[...]                      # f32 action, reused in the epilogue

    # Fused "concat" first layer: h = state @ W1_s + action @ W1_a + b1 ; ReLU.
    h = (jnp.dot(s, w1s_ref[...], preferred_element_type=jnp.float32)
         + jnp.dot(a.astype(w1a_ref.dtype), w1a_ref[...],
                   preferred_element_type=jnp.float32)
         + b1_ref[...])
    h = jnp.maximum(h, 0.0)

    # logits = h @ W2 + b2 (cast h to the weight dtype to keep the bf16 MXU
    # path when weights are bf16; no-op for f32 weights).
    logits = jnp.dot(h.astype(w2_ref.dtype), w2_ref[...],
                     preferred_element_type=jnp.float32) + b2_ref[...]

    # noise = phi * max_action * tanh(logits); out = clamp(noise + action).
    noise = (phi * max_action) * jnp.tanh(logits)
    o_ref[...] = jnp.clip(noise + a, -max_action, max_action).astype(o_ref.dtype)


def perturbation_forward(state, action, params, *, phi=0.05, max_action=1.0,
                         block_b=None, matmul_dtype=None):
    """Pallas-fused forward pass of the Perturbation module.

    state:  [B, S] f32, action: [B, A] f32.
    params: w1 [S+A, H], b1 [1, H], w2 [H, A], b2 [1, A]  (x @ W + b layout).
    block_b: optional batch-tile override (auto-derived otherwise).
    matmul_dtype: optionally jnp.bfloat16 (recommended for large B on
      v6e/v7x) — only the state stream and weights are cast; the action stays
      f32 so the epilogue add is exact.
    """
    w1, b1, w2, b2 = params["w1"], params["b1"], params["w2"], params["b2"]
    B, A = action.shape
    S = state.shape[-1]
    H = w1.shape[-1]
    out_dtype = action.dtype
    lane = 128

    # Split W1 so the state/action concat never materializes in HBM.
    w1_s = w1[:S]
    w1_a = w1[S:]

    # Hidden dim padded to full lanes. This is VMEM-resident only (weights are
    # DMA'd once), so it costs no HBM traffic; zero padding is mathematically
    # inert (relu(0)=0, zero W2 rows contribute 0).
    h_p = _round_up(H, lane)

    # bf16 path: pad the state K-dim to a multiple of 16 for clean sublane
    # packing of the resident [S, Hp] weight.
    s_k = S
    if matmul_dtype is not None and jnp.dtype(matmul_dtype).itemsize == 2:
        s_k = _round_up(S, 16)

    w1_s = _pad2(w1_s, (s_k, h_p))
    w1_a = _pad2(w1_a, (A, h_p))
    b1_p = _pad2(b1, (1, h_p)).astype(jnp.float32)
    w2_p = _pad2(w2, (h_p, A))
    b2_p = b2.astype(jnp.float32)

    # Batch tiling: target ~1024 rows per block (a row is only ~160 B once A
    # is unpadded), but guarantee >= 2 grid steps when B > 8 so the "parallel"
    # axis shards across both TensorCores on v7x.
    target = 1024 if block_b is None else int(block_b)
    bb = min(_round_up(target, 8), _round_up(B, 8))
    if B > 8:
        bb = min(bb, _round_up(pl.cdiv(B, 2), 8))
    bb = max(8, bb)
    b_pad = _round_up(B, bb)

    state_p = _pad2(state, (b_pad, s_k))
    action_p = _pad2(action, (b_pad, A)).astype(jnp.float32)  # stays f32

    if matmul_dtype is not None:
        # Cast only the state stream + weights in HBM (action kept f32).
        state_p = state_p.astype(matmul_dtype)
        w1_s = w1_s.astype(matmul_dtype)
        w1_a = w1_a.astype(matmul_dtype)
        w2_p = w2_p.astype(matmul_dtype)

    kernel = functools.partial(_perturbation_kernel,
                               phi=float(phi), max_action=float(max_action))

    grid = (b_pad // bb,)
    row_spec = lambda shape: pl.BlockSpec(shape, lambda i: (i, 0))   # batch-tiled
    rep_spec = lambda shape: pl.BlockSpec(shape, lambda i: (0, 0))   # VMEM-resident

    out_padded = pl.pallas_call(
        kernel,
        out_shape=jax.ShapeDtypeStruct((b_pad, A), out_dtype),
        grid=grid,
        in_specs=[
            row_spec((bb, s_k)),    # state  (last dim = full array dim)
            row_spec((bb, A)),      # action (unpadded, full last dim)
            rep_spec((s_k, h_p)),   # W1_s
            rep_spec((A, h_p)),     # W1_a
            rep_spec((1, h_p)),     # b1
            rep_spec((h_p, A)),     # W2
            rep_spec((1, A)),       # b2
        ],
        out_specs=row_spec((bb, A)),
        compiler_params=pltpu.CompilerParams(
            dimension_semantics=("parallel",),
            vmem_limit_bytes=8 * 1024 * 1024,   # working set is << 1 MiB
        ),
    )(state_p, action_p, w1_s, w1_a, b1_p, w2_p, b2_p)

    if b_pad != B:
        out_padded = out_padded[:B]
    return out_padded


def perturbation_reference(state, action, params, *, phi=0.05, max_action=1.0):
    """Pure-JAX reference for correctness check."""
    x = jnp.concatenate([state, action], axis=-1)
    h = jnp.maximum(x @ params["w1"] + params["b1"], 0.0)
    logits = h @ params["w2"] + params["b2"]
    noise = phi * max_action * jnp.tanh(logits)
    return jnp.clip(noise + action, -max_action, max_action)


if __name__ == "__main__":
    key = jax.random.PRNGKey(0)
    k_state, k_action, k_w1, k_b1, k_w2, k_b2 = jax.random.split(key, 6)

    # Small shapes consistent with the module's forward (non-multiple-of-8
    # batch on purpose, to exercise the tiled + padded path; auto block_b
    # gives a 2-step grid here).
    batch, state_dim, action_dim, hidden = 13, 24, 8, 32
    in_dim = state_dim + action_dim
    max_action, phi = 1.0, 0.05

    state = jax.random.normal(k_state, (batch, state_dim), dtype=jnp.float32)
    action = jax.random.uniform(k_action, (batch, action_dim),
                                dtype=jnp.float32, minval=-max_action,
                                maxval=max_action)

    # Deterministic synthetic MLP parameters (preprocess_net).
    params = {
        "w1": 0.1 * jax.random.normal(k_w1, (in_dim, hidden), dtype=jnp.float32),
        "b1": 0.1 * jax.random.normal(k_b1, (1, hidden), dtype=jnp.float32),
        "w2": 0.1 * jax.random.normal(k_w2, (hidden, action_dim), dtype=jnp.float32),
        "b2": 0.1 * jax.random.normal(k_b2, (1, action_dim), dtype=jnp.float32),
    }

    ref = perturbation_reference(state, action, params,
                                 phi=phi, max_action=max_action)

    # Exact f32 path, auto batch tiling (13 -> block 8, 2 grid steps).
    out = perturbation_forward(state, action, params,
                               phi=phi, max_action=max_action)
    out = jax.block_until_ready(out)
    assert out.shape == (batch, action_dim)
    assert jnp.allclose(out, ref, atol=1e-5, rtol=1e-5)

    # bf16 state/weight path (traffic optimization for large B on v6e/v7x).
    # Action stays f32 through the epilogue, so error is only in the
    # 0.05 * tanh(logits) term -> tight tolerance.
    out_bf16 = perturbation_forward(state, action, params,
                                    phi=phi, max_action=max_action,
                                    matmul_dtype=jnp.bfloat16)
    out_bf16 = jax.block_until_ready(out_bf16)
    assert out_bf16.shape == (batch, action_dim)
    assert jnp.allclose(out_bf16, ref, atol=5e-3, rtol=0.0)

    print("KERNEL_OK")
</pallas_src>

<mosaic_0001>
module attributes {stable_mosaic.version = 11 : i64} {
  func.func @_perturbation_kernel(%arg0: i32, %arg1: memref<8x24xf32, #tpu.memory_space<vmem>>, %arg2: memref<8x8xf32, #tpu.memory_space<vmem>>, %arg3: memref<24x128xf32, #tpu.memory_space<vmem>>, %arg4: memref<8x128xf32, #tpu.memory_space<vmem>>, %arg5: memref<1x128xf32, #tpu.memory_space<vmem>>, %arg6: memref<128x8xf32, #tpu.memory_space<vmem>>, %arg7: memref<1x8xf32, #tpu.memory_space<vmem>>, %arg8: memref<8x8xf32, #tpu.memory_space<vmem>>) attributes {dimension_semantics = [#tpu.dimension_semantics<parallel>], iteration_bounds = array<i64: 2>, scalar_prefetch = 0 : i64, scratch_operands = 0 : i64, tpu.core_type = #tpu.core_type<tc>, window_params = [{transform_indices = @transform_0, window_bounds = array<i64: 8, 24>}, {transform_indices = @transform_1, window_bounds = array<i64: 8, 8>}, {pipeline_mode = #tpu.pipeline_mode<synchronous>, transform_indices = @transform_2, window_bounds = array<i64: 24, 128>}, {pipeline_mode = #tpu.pipeline_mode<synchronous>, transform_indices = @transform_3, window_bounds = array<i64: 8, 128>}, {pipeline_mode = #tpu.pipeline_mode<synchronous>, transform_indices = @transform_4, window_bounds = array<i64: 1, 128>}, {pipeline_mode = #tpu.pipeline_mode<synchronous>, transform_indices = @transform_5, window_bounds = array<i64: 128, 8>}, {pipeline_mode = #tpu.pipeline_mode<synchronous>, transform_indices = @transform_6, window_bounds = array<i64: 1, 8>}, {transform_indices = @transform_7, window_bounds = array<i64: 8, 8>}]} {
    %c0 = arith.constant 0 : index
    %c0_0 = arith.constant 0 : index
    %0 = vector.load %arg1[%c0, %c0_0] : memref<8x24xf32, #tpu.memory_space<vmem>>, vector<8x24xf32>
    %c0_1 = arith.constant 0 : index
    %c0_2 = arith.constant 0 : index
    %1 = vector.load %arg2[%c0_1, %c0_2] : memref<8x8xf32, #tpu.memory_space<vmem>>, vector<8x8xf32>
    %c0_3 = arith.constant 0 : index
    %c0_4 = arith.constant 0 : index
    %2 = vector.load %arg3[%c0_3, %c0_4] : memref<24x128xf32, #tpu.memory_space<vmem>>, vector<24x128xf32>
    %cst = arith.constant dense<0.000000e+00> : vector<8x128xf32>
    %3 = tpu.matmul %0, %2, %cst {dimension_numbers = #tpu.dot_dimension_numbers<[1], [0], [0], [1], [0, 0, 1, 1], [], []>} : vector<8x24xf32>, vector<24x128xf32>, vector<8x128xf32> -> vector<8x128xf32>
    %c0_5 = arith.constant 0 : index
    %c0_6 = arith.constant 0 : index
    %4 = vector.load %arg4[%c0_5, %c0_6] : memref<8x128xf32, #tpu.memory_space<vmem>>, vector<8x128xf32>
    %cst_7 = arith.constant dense<0.000000e+00> : vector<8x128xf32>
    %5 = tpu.matmul %1, %4, %cst_7 {dimension_numbers = #tpu.dot_dimension_numbers<[1], [0], [0], [1], [0, 0, 1, 1], [], []>} : vector<8x8xf32>, vector<8x128xf32>, vector<8x128xf32> -> vector<8x128xf32>
    %6 = arith.addf %3, %5 : vector<8x128xf32>
    %c0_8 = arith.constant 0 : index
    %c0_9 = arith.constant 0 : index
    %7 = vector.load %arg5[%c0_8, %c0_9] : memref<1x128xf32, #tpu.memory_space<vmem>>, vector<1x128xf32>
    %8 = vector.broadcast %7 : vector<1x128xf32> to vector<8x128xf32>
    %9 = arith.addf %6, %8 : vector<8x128xf32>
    %cst_10 = arith.constant 0.000000e+00 : f32
    %10 = vector.broadcast %cst_10 : f32 to vector<8x128xf32>
    %11 = arith.maximumf %9, %10 : vector<8x128xf32>
    %c0_11 = arith.constant 0 : index
    %c0_12 = arith.constant 0 : index
    %12 = vector.load %arg6[%c0_11, %c0_12] : memref<128x8xf32, #tpu.memory_space<vmem>>, vector<128x8xf32>
    %cst_13 = arith.constant dense<0.000000e+00> : vector<8x8xf32>
    %13 = tpu.matmul %11, %12, %cst_13 {dimension_numbers = #tpu.dot_dimension_numbers<[1], [0], [0], [1], [0, 0, 1, 1], [], []>} : vector<8x128xf32>, vector<128x8xf32>, vector<8x8xf32> -> vector<8x8xf32>
    %c0_14 = arith.constant 0 : index
    %c0_15 = arith.constant 0 : index
    %14 = vector.load %arg7[%c0_14, %c0_15] : memref<1x8xf32, #tpu.memory_space<vmem>>, vector<1x8xf32>
    %15 = vector.broadcast %14 : vector<1x8xf32> to vector<8x8xf32>
    %16 = arith.addf %13, %15 : vector<8x8xf32>
    %17 = math.tanh %16 : vector<8x8xf32>
    %cst_16 = arith.constant 5.000000e-02 : f32
    %18 = vector.broadcast %cst_16 : f32 to vector<8x8xf32>
    %19 = arith.mulf %18, %17 : vector<8x8xf32>
    %20 = arith.addf %19, %1 : vector<8x8xf32>
    %cst_17 = arith.constant -1.000000e+00 : f32
    %cst_18 = arith.constant 1.000000e+00 : f32
    %21 = vector.broadcast %cst_17 : f32 to vector<8x8xf32>
    %22 = arith.maximumf %21, %20 : vector<8x8xf32>
    %23 = vector.broadcast %cst_18 : f32 to vector<8x8xf32>
    %24 = arith.minimumf %23, %22 : vector<8x8xf32>
    %c0_19 = arith.constant 0 : index
    %c0_20 = arith.constant 0 : index
    %25 = vector.load %arg8[%c0_19, %c0_20] : memref<8x8xf32, #tpu.memory_space<vmem>>, vector<8x8xf32>
    tpu.vector_store %arg8[%c0_19, %c0_20], %24 {strides = array<i32>} : memref<8x8xf32, #tpu.memory_space<vmem>>, vector<8x8xf32>,
    return
  }
  func.func @transform_0(%arg0: i32) -> (i32, i32) {
    %c0_i32 = arith.constant 0 : i32
    %c0_i32_0 = arith.constant 0 : i32
    return %arg0, %c0_i32 : i32, i32
  }
  func.func @transform_1(%arg0: i32) -> (i32, i32) {
    %c0_i32 = arith.constant 0 : i32
    %c0_i32_0 = arith.constant 0 : i32
    return %arg0, %c0_i32 : i32, i32
  }
  func.func @transform_2(%arg0: i32) -> (i32, i32) {
    %c0_i32 = arith.constant 0 : i32
    %c0_i32_0 = arith.constant 0 : i32
    %c0_i32_1 = arith.constant 0 : i32
    return %c0_i32, %c0_i32_0 : i32, i32
  }
  func.func @transform_3(%arg0: i32) -> (i32, i32) {
    %c0_i32 = arith.constant 0 : i32
    %c0_i32_0 = arith.constant 0 : i32
    %c0_i32_1 = arith.constant 0 : i32
    return %c0_i32, %c0_i32_0 : i32, i32
  }
  func.func @transform_4(%arg0: i32) -> (i32, i32) {
    %c0_i32 = arith.constant 0 : i32
    %c0_i32_0 = arith.constant 0 : i32
    %c0_i32_1 = arith.constant 0 : i32
    return %c0_i32, %c0_i32_0 : i32, i32
  }
  func.func @transform_5(%arg0: i32) -> (i32, i32) {
    %c0_i32 = arith.constant 0 : i32
    %c0_i32_0 = arith.constant 0 : i32
    %c0_i32_1 = arith.constant 0 : i32
    return %c0_i32, %c0_i32_0 : i32, i32
  }
  func.func @transform_6(%arg0: i32) -> (i32, i32) {
    %c0_i32 = arith.constant 0 : i32
    %c0_i32_0 = arith.constant 0 : i32
    %c0_i32_1 = arith.constant 0 : i32
    return %c0_i32, %c0_i32_0 : i32, i32
  }
  func.func @transform_7(%arg0: i32) -> (i32, i32) {
    %c0_i32 = arith.constant 0 : i32
    %c0_i32_0 = arith.constant 0 : i32
    return %arg0, %c0_i32 : i32, i32
  }
}

</mosaic_0001>

<bundles_post_ra>
// kernel: tpu_custom_call.1
= control target key start
LH: loop header
LB: loop body
LE: loop exit
PB: predicated region body
PF: predicated region fallthrough
CT: control target
= control target key end

     0   :  { %s535_s24 = smov 0   ;;  %s628_s0 = inlined_call_operand.vmem [shape: f32[16,24], index: 0, kind: input, shape index: {}]   ;;  %s629_s1 = inlined_call_operand.vmem [shape: f32[16,8], index: 1, kind: input, shape index: {}]   ;;  %s630_s2 = inlined_call_operand.vmem [shape: f32[24,128], index: 2, kind: input, shape index: {}]   ;;  %s631_s3 = inlined_call_operand.vmem [shape: f32[8,128], index: 3, kind: input, shape index: {}]   ;;  %s632_s4 = inlined_call_operand.vmem [shape: f32[1,128], index: 4, kind: input, shape index: {}]   ;;  %s633_s5 = inlined_call_operand.vmem [shape: f32[128,8], index: 5, kind: input, shape index: {}]   ;;  %s634_s6 = inlined_call_operand.vmem [shape: f32[1,8], index: 6, kind: input, shape index: {}]   ;;  %s635_s7 = inlined_call_operand.vmem [shape: f32[16,8], index: 7, kind: output, shape index: {}]  }
   0x1 LB: > { %s462_s25 = sadd.s32 4294967295, %s493_s24   ;;  %p466_p0 = scmp.ge.s32.totalorder %s493_s24, 1  ;;  %s493_s24 = sphi %s535_s24, %s17_s24  }
   0x2   : > { %p245_p1 = scmp.lt.s32.totalorder %s493_s24, 3 }
   0x4   : > { %p246_p2 = pnand %p466_p0, %p245_p1 }
   0x5   : > { %p279_p3 = scmp.lt.s32.totalorder (!%p246_p2), %s462_s25, 1 }
   0x6   : > { %249 = sbr.rel (%p246_p2) target bundleno = 297 (0x129), region = 48 }
   0xb   : > { %v295_v0 = vld [vmem:[%s630_s2 + $0x10] sm:$0xff]  ;;  %v294_v1 = vld [vmem:[%s630_s2 + $0x8] sm:$0xff]  ;;  %v296_v2 = vld [vmem:[%s631_s3] sm:$0xff]  ;;  %s637_s25 = smov (!%p279_p3, %s462_s25), 1  ;;  %vm297_vm0 = vcmask 64512   ;;  %vm321_vm1 = vcmask 195584  }
   0xc   : > { %338 = vmatpush.msra.mxu1 %v295_v0  ;;  %316 = vmatpush.msra.mxu0 %v296_v2  ;;  %v366_v3 = vld [vmem:[%s633_s5 + $0x78] sm:$0xff]  ;;  %v365_v4 = vld [vmem:[%s633_s5 + $0x70] sm:$0xff]  ;;  %v293_v5 = vld [vmem:[%s630_s2] sm:$0xff]  ;;  %s564_s17 = sshll.u32 %s637_s25, 3 }
   0xd   : > { %371 = vmatpush.msra.mxu2 %v366_v3  ;;  %v364_v6 = vld [vmem:[%s633_s5 + $0x68] sm:$0xff]  ;;  %s286_s20 = scalar_lea.vmem %s629_s1, %s564_s17  ;;  %v363_v7 = vld [vmem:[%s633_s5 + $0x60] sm:$0xff]  ;;  %s282_s25 = scalar_lea.vmem %s628_s0, %s564_s17  ;;  %v362_v10 = vld [vmem:[%s633_s5 + $0x58] sm:$0xff] }
   0xe   : > { %339 = vmatpush.msra.mxu1 %v294_v1  ;;  %v292_v8 = vld [vmem:[%s286_s20] sm:$0xff]  ;;  %v361_v11 = vld [vmem:[%s633_s5 + $0x50] sm:$0xff]  ;;  %v360_v12 = vld [vmem:[%s633_s5 + $0x48] sm:$0xff]  ;;  %s290_s13 = scalar_lea.vmem %s635_s7, %s564_s17 }
   0xf   : > { %372 = vmatpush.msra.mxu2 %v365_v4  ;;  %470 = vmatmul.msk.f32.vlgmr.msra.gmra.mxu0 %vm297_vm0, %v292_v8  ;;  %v291_v9 = vld [vmem:[%s282_s25] sm:$0xff]  ;;  %v358_v14 = vld [vmem:[%s633_s5 + $0x38] sm:$0xff]  ;;  %v357_v15 = vld [vmem:[%s633_s5 + $0x30] sm:$0xff] }
  0x10   : > { %340 = vmatpush.msra.mxu1 %v293_v5  ;;  %v359_v13 = vld [vmem:[%s633_s5 + $0x40] sm:$0xff]  ;;  %v356_v16 = vld [vmem:[%s633_s5 + $0x28] sm:$0xff]  ;;  %v354_v18 = vld [vmem:[%s633_s5 + $0x18] sm:$0xff] }
  0x11   : > { %373 = vmatpush.msra.mxu2 %v364_v6  ;;  %471 = vmatmul.msk.f32.vlgmr.msra.gmra.mxu1 %vm321_vm1, %v291_v9  ;;  %v355_v17 = vld [vmem:[%s633_s5 + $0x20] sm:$0xff]  ;;  %v353_v19 = vld [vmem:[%s633_s5 + $0x10] sm:$0xff]  ;;  %v352_v20 = vld [vmem:[%s633_s5 + $0x8] sm:$0xff] }
  0x12   : > { %v351_v21 = vld [vmem:[%s633_s5] sm:$0xff] }
  0x13   : > { %374 = vmatpush.msra.mxu2 %v363_v7  ;;  %v483_v23 = vld [vmem:[%s632_s4] ss:$0 sm:$0xff] }
  0x14   : > { %v484_v28 = vld [vmem:[%s634_s6] ss:$0 sm:$0xff] }
  0x15   : > { %375 = vmatpush.msra.mxu2 %v362_v10 }
  0x17   : > { %376 = vmatpush.msra.mxu2 %v361_v11 }
  0x19   : > { %377 = vmatpush.msra.mxu2 %v360_v12 }
  0x1b   : > { %378 = vmatpush.msra.mxu2 %v359_v13 }
  0x1d   : > { %379 = vmatpush.msra.mxu2 %v358_v14 }
  0x1f   : > { %380 = vmatpush.msra.mxu2 %v357_v15 }
  0x21   : > { %381 = vmatpush.msra.mxu2 %v356_v16 }
  0x23   : > { %382 = vmatpush.msra.mxu2 %v355_v17 }
  0x25   : > { %383 = vmatpush.msra.mxu2 %v354_v18 }
  0x27   : > { %384 = vmatpush.msra.mxu2 %v353_v19 }
  0x29   : > { %385 = vmatpush.msra.mxu2 %v352_v20 }
  0x2b   : > { %386 = vmatpush.msra.mxu2 %v351_v21 }
  0x8c   : > { %v318_v22 = vpop.f32.mrf.mxu0 }
  0x8e   : > { %v342_v24 = vpop.f32.mrf.mxu1 }
  0x8f   : > { %v343_v25 = vadd.f32 %v342_v24, %v318_v22 }
  0x91   : > { %v349_v26 = vadd.f32 %v483_v23, %v343_v25 }
  0x93   : > { %v350_v27 = vmax.f32 %v349_v26, 0.0 }
  0x95   : > { %387 = vmatmul.f32.vlgmr.msra.gmra.mxu2 %v350_v27 }
 0x118   : > { %v388_v29 = vpop.f32.mrf.mxu2 }
 0x119   : > { %v389_v30 = vadd.f32 %v484_v28, %v388_v29 }
 0x11b   : > { %485 = vtanh.f32 %v389_v30 }
 0x121   : > { %v486_v31 = vpop.eup %485 }
 0x122   : > { %v392_v32 = vmul.f32 0.05, %v486_v31 }
 0x124   : > { %v393_v33 = vadd.f32 %v392_v32, %v292_v8 }
 0x126   : > { %v472_v34 = vclamps-f32 %v393_v33, 1.0 }
 0x128   : > { %396 = vst.msk [vmem:[%s290_s13] sm:$0xff] %vm297_vm0, %v472_v34 }
 0x129 PF: > { %s17_s24 = sadd.s32 1, %s493_s24  }
 0x12a   : > { %p14_p4 = scmp.ge.s32.totalorder %s17_s24, 4  }
 0x12c   :  { %16 = sbr.rel (!%p14_p4) target bundleno = 1 (0x1), region = 81 }

</bundles_post_ra>
